<compile_context>
chip_gen: v7x
topology: tpu7x:2x2x1
jax: 0.10.0
libtpu: 0.0.40
codegen_flags: <defaults>
</compile_context>

<pallas_src>
import jax
import jax.numpy as jnp
from jax.experimental import pallas as pl
from jax.experimental.pallas import tpu as pltpu

_POOL_K = 5
_POOL_S = 2
_HALO = 8          # left-halo rows of the padded scratch (8-aligned body store)


def _conv_block_kernel(x_ref, w_ref, b_ref, o_ref, xp_s):
    """One grid step processes a (B, C, L) batch tile.

    x_ref : (B, C, L)       input tile, PyTorch NCL layout (no channel pad)
    w_ref : (K, Cin, Cout)  conv weight, one (C, C) tap matrix per k
    b_ref : (1, C)          conv bias
    o_ref : (B, Lout, C)    pooled output (NLC; wrapper transposes back to NCL)
    xp_s  : (B, Lp_s, C) f32 scratch: [8-row left halo | L body rows | right halo]
    """
    B, C, L = x_ref.shape
    K = w_ref.shape[0]
    pad = (K - 1) // 2
    Lp_s = xp_s.shape[1]
    Lout = o_ref.shape[1]
    M = B * L

    w = w_ref[...].astype(jnp.float32)        # (K, C, C), hoisted once
    b = b_ref[...].astype(jnp.float32)        # (1, C); add is a sublane splat

    # Zero only the halo rows (once).  Body rows are always overwritten before
    # being read, and the pool windows never reach the halo (valid pooling).
    xp_s[:, :_HALO, :] = jnp.zeros((B, _HALO, C), jnp.float32)
    if Lp_s > _HALO + L:
        xp_s[:, _HALO + L:Lp_s, :] = jnp.zeros(
            (B, Lp_s - _HALO - L, C), jnp.float32)

    # NCL -> NLC transpose done in VMEM via per-batch 2-D transposes, written
    # straight into the 8-aligned body of the scratch (no wrapper HBM relayout).
    for bi in range(B):                       # statically unrolled, B is small
        xp_s[bi, _HALO:_HALO + L, :] = x_ref[bi].astype(jnp.float32).T
    x_blc = xp_s[:, _HALO:_HALO + L, :]       # snapshot for the residual add

    def conv_from_body():
        # 'same' conv of whatever currently sits in the scratch body.
        # K tap-accumulated matmuls; MXU work identical to im2col but without
        # the lane-concat / (B, L, K*C) materialization.
        acc = None
        for k in range(K):                    # statically unrolled
            lo = _HALO - pad + k
            lhs = xp_s[:, lo:lo + L, :].reshape(M, C)
            part = jnp.dot(lhs, w[k], preferred_element_type=jnp.float32)
            acc = part if acc is None else acc + part
        # TODO(synk): for small C, pack taps into 128-lane contraction groups
        # (block-diagonal weight) to lift MXU lane utilization above C/128.
        return (acc + b).reshape(B, L, C)

    # ResidualBlock: conv -> relu(inplace) -> conv -> + original_x
    # TODO(synk): bf16 MXU operands (f32 accumulate) once accuracy budget allows.
    h1 = jnp.maximum(conv_from_body(), 0.0)
    xp_s[:, _HALO:_HALO + L, :] = h1          # 8-aligned body store
    h2 = conv_from_body()

    # ConvolutionalBlock: relu(inplace), then MaxPool1d(5, stride=2), valid.
    r = jnp.maximum(h2 + x_blc, 0.0)
    xp_s[:, _HALO:_HALO + L, :] = r           # reuse scratch for strided reads

    # Stride-2 window max via sublane-strided reads: no lane-fold relayout and
    # no full-length misaligned shifts; reads stay inside the body rows.
    m = xp_s[:, pl.ds(_HALO, Lout, stride=_POOL_S), :]
    for j in range(1, _POOL_K):
        m = jnp.maximum(m, xp_s[:, pl.ds(_HALO + j, Lout, stride=_POOL_S), :])
    o_ref[...] = m.astype(o_ref.dtype)


def convolutional_block(x_ncl, w_torch, bias):
    """x_ncl: (N, C, L) like PyTorch; w_torch: (Cout, Cin, K); bias: (C,)."""
    N, C, L = x_ncl.shape
    K = w_torch.shape[-1]
    assert L >= _POOL_K, "MaxPool1d(5, stride=2) needs L >= 5"
    pad = (K - 1) // 2
    Lout = (L - _POOL_K) // _POOL_S + 1
    Lp_s = ((_HALO + L + pad + 7) // 8) * 8   # scratch rows (sublane-rounded)

    # Per-step batch tile B:
    #  * >= 2 grid steps whenever N >= 2 so both v7x TensorCores get work,
    #  * ~4 steps when N allows so BlockSpec double-buffering hides the DMAs,
    #  * per-step VMEM well under budget (v7x has only 64 MiB physical VMEM).
    lane_c = max(C, 128)                      # lanes are padded to 128 anyway
    per_b_bytes = 4 * (2 * C * L              # double-buffered input block
                       + 2 * Lout * lane_c    # double-buffered output block
                       + Lp_s * lane_c        # xp_s scratch
                       + 6 * L * lane_c)      # x_blc/h1/h2/r + per-tap slices
    vmem_budget = 16 * 1024 * 1024
    b_max = max(1, vmem_budget // max(per_b_bytes, 1))
    target_steps = min(N, 4)
    B = max(1, min(N, b_max, N // target_steps))
    while B > 1 and N % B:                    # uniform batch tiles
        B -= 1
    G = N // B
    # TODO(synk): for very long L, add an L-tile grid axis with an overlapping
    # (conv-halo) input window instead of batch-only tiling.

    # One-time parameter prep (tiny): torch (Cout, Cin, K) -> (K, Cin, Cout).
    w_kio = jnp.transpose(w_torch, (2, 1, 0))
    b2 = bias.reshape(1, C)

    out_nlc = pl.pallas_call(
        _conv_block_kernel,
        out_shape=jax.ShapeDtypeStruct((N, Lout, C), x_ncl.dtype),
        grid=(G,),
        in_specs=[
            pl.BlockSpec((B, C, L), lambda g: (g, 0, 0)),
            pl.BlockSpec((K, C, C), lambda g: (0, 0, 0)),
            pl.BlockSpec((1, C), lambda g: (0, 0)),
        ],
        out_specs=pl.BlockSpec((B, Lout, C), lambda g: (g, 0, 0)),
        scratch_shapes=[pltpu.VMEM((B, Lp_s, C), jnp.float32)],
        compiler_params=pltpu.CompilerParams(
            dimension_semantics=("parallel",),
            vmem_limit_bytes=32 * 1024 * 1024),
    )(x_ncl, w_kio, b2)

    # The pooled NLC output is the smallest tensor in the pipeline; its
    # NLC -> NCL transpose is left to XLA (cheaper than a non-8-aligned
    # in-kernel transpose plus Lout-wide masked stores).
    return jnp.transpose(out_nlc, (0, 2, 1))


def _reference(x_ncl, w_torch, bias):
    """Pure-JAX reference matching the PyTorch forward."""
    def conv(h):
        y = jax.lax.conv_general_dilated(
            h, w_torch, window_strides=(1,), padding="SAME",
            dimension_numbers=("NCH", "OIH", "NCH"))
        return y + bias[None, :, None]

    h1 = jax.nn.relu(conv(x_ncl))
    h2 = conv(h1)
    r = jax.nn.relu(h2 + x_ncl)
    return jax.lax.reduce_window(
        r, -jnp.inf, jax.lax.max,
        window_dimensions=(1, 1, _POOL_K), window_strides=(1, 1, _POOL_S),
        padding="VALID")


if __name__ == "__main__":
    N, C, L, K = 2, 32, 16, 5     # num_neurons = 32 (module default)

    key = jax.random.PRNGKey(0)
    kx, kw, kb = jax.random.split(key, 3)
    x = jax.random.normal(kx, (N, C, L), dtype=jnp.float32)
    # Deterministic synthetic parameters (PyTorch Conv1d weight: (Cout, Cin, K))
    w = 0.1 * jax.random.normal(kw, (C, C, K), dtype=jnp.float32)
    b = 0.05 * jax.random.normal(kb, (C,), dtype=jnp.float32)

    out = convolutional_block(x, w, b)
    out = jax.block_until_ready(out)

    ref = jax.block_until_ready(_reference(x, w, b))
    assert out.shape == ref.shape, (out.shape, ref.shape)
    assert jnp.allclose(out, ref, atol=1e-4, rtol=1e-4), \
        float(jnp.max(jnp.abs(out - ref)))

    print("KERNEL_OK")
</pallas_src>

<mosaic_0001>
module attributes {stable_mosaic.version = 11 : i64} {
  func.func @_conv_block_kernel(%arg0: i32, %arg1: memref<1x32x16xf32, #tpu.memory_space<vmem>>, %arg2: memref<5x32x32xf32, #tpu.memory_space<vmem>>, %arg3: memref<1x32xf32, #tpu.memory_space<vmem>>, %arg4: memref<1x6x32xf32, #tpu.memory_space<vmem>>, %arg5: memref<1x32x32xf32, #tpu.memory_space<vmem>>) attributes {dimension_semantics = [#tpu.dimension_semantics<parallel>], iteration_bounds = array<i64: 2>, scalar_prefetch = 0 : i64, scratch_operands = 1 : i64, tpu.core_type = #tpu.core_type<tc>, window_params = [{transform_indices = @transform_0, window_bounds = array<i64: 1, 32, 16>}, {pipeline_mode = #tpu.pipeline_mode<synchronous>, transform_indices = @transform_1, window_bounds = array<i64: 5, 32, 32>}, {pipeline_mode = #tpu.pipeline_mode<synchronous>, transform_indices = @transform_2, window_bounds = array<i64: 1, 32>}, {transform_indices = @transform_3, window_bounds = array<i64: 1, 6, 32>}]} {
    %c0 = arith.constant 0 : index
    %c0_0 = arith.constant 0 : index
    %c0_1 = arith.constant 0 : index
    %0 = vector.load %arg2[%c0, %c0_0, %c0_1] : memref<5x32x32xf32, #tpu.memory_space<vmem>>, vector<5x32x32xf32>
    %c0_2 = arith.constant 0 : index
    %c0_3 = arith.constant 0 : index
    %1 = vector.load %arg3[%c0_2, %c0_3] : memref<1x32xf32, #tpu.memory_space<vmem>>, vector<1x32xf32>
    %cst = arith.constant 0.000000e+00 : f32
    %2 = vector.broadcast %cst : f32 to vector<1x8x32xf32>
    %c0_4 = arith.constant 0 : index
    %c0_5 = arith.constant 0 : index
    %c0_6 = arith.constant 0 : index
    %3 = vector.load %arg5[%c0_4, %c0_5, %c0_6] : memref<1x32x32xf32, #tpu.memory_space<vmem>>, vector<1x8x32xf32>
    tpu.vector_store %arg5[%c0_4, %c0_5, %c0_6], %2 {strides = array<i32>} : memref<1x32x32xf32, #tpu.memory_space<vmem>>, vector<1x8x32xf32>,
    %cst_7 = arith.constant 0.000000e+00 : f32
    %4 = vector.broadcast %cst_7 : f32 to vector<1x8x32xf32>
    %c0_8 = arith.constant 0 : index
    %c24 = arith.constant 24 : index
    %c0_9 = arith.constant 0 : index
    %5 = vector.load %arg5[%c0_8, %c24, %c0_9] : memref<1x32x32xf32, #tpu.memory_space<vmem>>, vector<1x8x32xf32>
    tpu.vector_store %arg5[%c0_8, %c24, %c0_9], %4 {strides = array<i32>} : memref<1x32x32xf32, #tpu.memory_space<vmem>>, vector<1x8x32xf32>,
    %c0_10 = arith.constant 0 : index
    %c0_11 = arith.constant 0 : index
    %c0_12 = arith.constant 0 : index
    %6 = vector.load %arg1[%c0_10, %c0_11, %c0_12] : memref<1x32x16xf32, #tpu.memory_space<vmem>>, vector<1x32x16xf32>
    %7 = vector.shape_cast %6 : vector<1x32x16xf32> to vector<32x16xf32>
    %8 = tpu.transpose %7, [1, 0] : vector<32x16xf32> -> vector<16x32xf32>
    %c0_13 = arith.constant 0 : index
    %c8 = arith.constant 8 : index
    %c0_14 = arith.constant 0 : index
    %9 = vector.load %arg5[%c0_13, %c8, %c0_14] : memref<1x32x32xf32, #tpu.memory_space<vmem>>, vector<1x16x32xf32>
    %10 = vector.shape_cast %9 : vector<1x16x32xf32> to vector<16x32xf32>
    %11 = vector.shape_cast %8 : vector<16x32xf32> to vector<1x16x32xf32>
    tpu.vector_store %arg5[%c0_13, %c8, %c0_14], %11 {strides = array<i32>} : memref<1x32x32xf32, #tpu.memory_space<vmem>>, vector<1x16x32xf32>,
    %c0_15 = arith.constant 0 : index
    %c8_16 = arith.constant 8 : index
    %c0_17 = arith.constant 0 : index
    %12 = vector.load %arg5[%c0_15, %c8_16, %c0_17] : memref<1x32x32xf32, #tpu.memory_space<vmem>>, vector<1x16x32xf32>
    %c0_18 = arith.constant 0 : index
    %c6 = arith.constant 6 : index
    %c0_19 = arith.constant 0 : index
    %13 = vector.load %arg5[%c0_18, %c6, %c0_19] : memref<1x32x32xf32, #tpu.memory_space<vmem>>, vector<1x16x32xf32>
    %14 = vector.shape_cast %13 : vector<1x16x32xf32> to vector<16x32xf32>
    %15 = vector.extract_strided_slice %0 {offsets = [0, 0, 0], sizes = [1, 32, 32], strides = [1, 1, 1]} : vector<5x32x32xf32> to vector<1x32x32xf32>
    %16 = vector.shape_cast %15 : vector<1x32x32xf32> to vector<32x32xf32>
    %cst_20 = arith.constant dense<0.000000e+00> : vector<16x32xf32>
    %17 = tpu.matmul %14, %16, %cst_20 {dimension_numbers = #tpu.dot_dimension_numbers<[1], [0], [0], [1], [0, 0, 1, 1], [], []>} : vector<16x32xf32>, vector<32x32xf32>, vector<16x32xf32> -> vector<16x32xf32>
    %c0_21 = arith.constant 0 : index
    %c7 = arith.constant 7 : index
    %c0_22 = arith.constant 0 : index
    %18 = vector.load %arg5[%c0_21, %c7, %c0_22] : memref<1x32x32xf32, #tpu.memory_space<vmem>>, vector<1x16x32xf32>
    %19 = vector.shape_cast %18 : vector<1x16x32xf32> to vector<16x32xf32>
    %20 = vector.extract_strided_slice %0 {offsets = [1, 0, 0], sizes = [1, 32, 32], strides = [1, 1, 1]} : vector<5x32x32xf32> to vector<1x32x32xf32>
    %21 = vector.shape_cast %20 : vector<1x32x32xf32> to vector<32x32xf32>
    %cst_23 = arith.constant dense<0.000000e+00> : vector<16x32xf32>
    %22 = tpu.matmul %19, %21, %cst_23 {dimension_numbers = #tpu.dot_dimension_numbers<[1], [0], [0], [1], [0, 0, 1, 1], [], []>} : vector<16x32xf32>, vector<32x32xf32>, vector<16x32xf32> -> vector<16x32xf32>
    %23 = arith.addf %17, %22 : vector<16x32xf32>
    %c0_24 = arith.constant 0 : index
    %c8_25 = arith.constant 8 : index
    %c0_26 = arith.constant 0 : index
    %24 = vector.load %arg5[%c0_24, %c8_25, %c0_26] : memref<1x32x32xf32, #tpu.memory_space<vmem>>, vector<1x16x32xf32>
    %25 = vector.shape_cast %24 : vector<1x16x32xf32> to vector<16x32xf32>
    %26 = vector.extract_strided_slice %0 {offsets = [2, 0, 0], sizes = [1, 32, 32], strides = [1, 1, 1]} : vector<5x32x32xf32> to vector<1x32x32xf32>
    %27 = vector.shape_cast %26 : vector<1x32x32xf32> to vector<32x32xf32>
    %cst_27 = arith.constant dense<0.000000e+00> : vector<16x32xf32>
    %28 = tpu.matmul %25, %27, %cst_27 {dimension_numbers = #tpu.dot_dimension_numbers<[1], [0], [0], [1], [0, 0, 1, 1], [], []>} : vector<16x32xf32>, vector<32x32xf32>, vector<16x32xf32> -> vector<16x32xf32>
    %29 = arith.addf %23, %28 : vector<16x32xf32>
    %c0_28 = arith.constant 0 : index
    %c9 = arith.constant 9 : index
    %c0_29 = arith.constant 0 : index
    %30 = vector.load %arg5[%c0_28, %c9, %c0_29] : memref<1x32x32xf32, #tpu.memory_space<vmem>>, vector<1x16x32xf32>
    %31 = vector.shape_cast %30 : vector<1x16x32xf32> to vector<16x32xf32>
    %32 = vector.extract_strided_slice %0 {offsets = [3, 0, 0], sizes = [1, 32, 32], strides = [1, 1, 1]} : vector<5x32x32xf32> to vector<1x32x32xf32>
    %33 = vector.shape_cast %32 : vector<1x32x32xf32> to vector<32x32xf32>
    %cst_30 = arith.constant dense<0.000000e+00> : vector<16x32xf32>
    %34 = tpu.matmul %31, %33, %cst_30 {dimension_numbers = #tpu.dot_dimension_numbers<[1], [0], [0], [1], [0, 0, 1, 1], [], []>} : vector<16x32xf32>, vector<32x32xf32>, vector<16x32xf32> -> vector<16x32xf32>
    %35 = arith.addf %29, %34 : vector<16x32xf32>
    %c0_31 = arith.constant 0 : index
    %c10 = arith.constant 10 : index
    %c0_32 = arith.constant 0 : index
    %36 = vector.load %arg5[%c0_31, %c10, %c0_32] : memref<1x32x32xf32, #tpu.memory_space<vmem>>, vector<1x16x32xf32>
    %37 = vector.shape_cast %36 : vector<1x16x32xf32> to vector<16x32xf32>
    %38 = vector.extract_strided_slice %0 {offsets = [4, 0, 0], sizes = [1, 32, 32], strides = [1, 1, 1]} : vector<5x32x32xf32> to vector<1x32x32xf32>
    %39 = vector.shape_cast %38 : vector<1x32x32xf32> to vector<32x32xf32>
    %cst_33 = arith.constant dense<0.000000e+00> : vector<16x32xf32>
    %40 = tpu.matmul %37, %39, %cst_33 {dimension_numbers = #tpu.dot_dimension_numbers<[1], [0], [0], [1], [0, 0, 1, 1], [], []>} : vector<16x32xf32>, vector<32x32xf32>, vector<16x32xf32> -> vector<16x32xf32>
    %41 = arith.addf %35, %40 : vector<16x32xf32>
    %42 = vector.broadcast %1 : vector<1x32xf32> to vector<16x32xf32>
    %43 = arith.addf %41, %42 : vector<16x32xf32>
    %44 = vector.shape_cast %43 : vector<16x32xf32> to vector<1x16x32xf32>
    %cst_34 = arith.constant 0.000000e+00 : f32
    %45 = vector.broadcast %cst_34 : f32 to vector<1x16x32xf32>
    %46 = arith.maximumf %44, %45 : vector<1x16x32xf32>
    %c0_35 = arith.constant 0 : index
    %c8_36 = arith.constant 8 : index
    %c0_37 = arith.constant 0 : index
    %47 = vector.load %arg5[%c0_35, %c8_36, %c0_37] : memref<1x32x32xf32, #tpu.memory_space<vmem>>, vector<1x16x32xf32>
    tpu.vector_store %arg5[%c0_35, %c8_36, %c0_37], %46 {strides = array<i32>} : memref<1x32x32xf32, #tpu.memory_space<vmem>>, vector<1x16x32xf32>,
    %c0_38 = arith.constant 0 : index
    %c6_39 = arith.constant 6 : index
    %c0_40 = arith.constant 0 : index
    %48 = vector.load %arg5[%c0_38, %c6_39, %c0_40] : memref<1x32x32xf32, #tpu.memory_space<vmem>>, vector<1x16x32xf32>
    %49 = vector.shape_cast %48 : vector<1x16x32xf32> to vector<16x32xf32>
    %50 = vector.extract_strided_slice %0 {offsets = [0, 0, 0], sizes = [1, 32, 32], strides = [1, 1, 1]} : vector<5x32x32xf32> to vector<1x32x32xf32>
    %51 = vector.shape_cast %50 : vector<1x32x32xf32> to vector<32x32xf32>
    %cst_41 = arith.constant dense<0.000000e+00> : vector<16x32xf32>
    %52 = tpu.matmul %49, %51, %cst_41 {dimension_numbers = #tpu.dot_dimension_numbers<[1], [0], [0], [1], [0, 0, 1, 1], [], []>} : vector<16x32xf32>, vector<32x32xf32>, vector<16x32xf32> -> vector<16x32xf32>
    %c0_42 = arith.constant 0 : index
    %c7_43 = arith.constant 7 : index
    %c0_44 = arith.constant 0 : index
    %53 = vector.load %arg5[%c0_42, %c7_43, %c0_44] : memref<1x32x32xf32, #tpu.memory_space<vmem>>, vector<1x16x32xf32>
    %54 = vector.shape_cast %53 : vector<1x16x32xf32> to vector<16x32xf32>
    %55 = vector.extract_strided_slice %0 {offsets = [1, 0, 0], sizes = [1, 32, 32], strides = [1, 1, 1]} : vector<5x32x32xf32> to vector<1x32x32xf32>
    %56 = vector.shape_cast %55 : vector<1x32x32xf32> to vector<32x32xf32>
    %cst_45 = arith.constant dense<0.000000e+00> : vector<16x32xf32>
    %57 = tpu.matmul %54, %56, %cst_45 {dimension_numbers = #tpu.dot_dimension_numbers<[1], [0], [0], [1], [0, 0, 1, 1], [], []>} : vector<16x32xf32>, vector<32x32xf32>, vector<16x32xf32> -> vector<16x32xf32>
    %58 = arith.addf %52, %57 : vector<16x32xf32>
    %c0_46 = arith.constant 0 : index
    %c8_47 = arith.constant 8 : index
    %c0_48 = arith.constant 0 : index
    %59 = vector.load %arg5[%c0_46, %c8_47, %c0_48] : memref<1x32x32xf32, #tpu.memory_space<vmem>>, vector<1x16x32xf32>
    %60 = vector.shape_cast %59 : vector<1x16x32xf32> to vector<16x32xf32>
    %61 = vector.extract_strided_slice %0 {offsets = [2, 0, 0], sizes = [1, 32, 32], strides = [1, 1, 1]} : vector<5x32x32xf32> to vector<1x32x32xf32>
    %62 = vector.shape_cast %61 : vector<1x32x32xf32> to vector<32x32xf32>
    %cst_49 = arith.constant dense<0.000000e+00> : vector<16x32xf32>
    %63 = tpu.matmul %60, %62, %cst_49 {dimension_numbers = #tpu.dot_dimension_numbers<[1], [0], [0], [1], [0, 0, 1, 1], [], []>} : vector<16x32xf32>, vector<32x32xf32>, vector<16x32xf32> -> vector<16x32xf32>
    %64 = arith.addf %58, %63 : vector<16x32xf32>
    %c0_50 = arith.constant 0 : index
    %c9_51 = arith.constant 9 : index
    %c0_52 = arith.constant 0 : index
    %65 = vector.load %arg5[%c0_50, %c9_51, %c0_52] : memref<1x32x32xf32, #tpu.memory_space<vmem>>, vector<1x16x32xf32>
    %66 = vector.shape_cast %65 : vector<1x16x32xf32> to vector<16x32xf32>
    %67 = vector.extract_strided_slice %0 {offsets = [3, 0, 0], sizes = [1, 32, 32], strides = [1, 1, 1]} : vector<5x32x32xf32> to vector<1x32x32xf32>
    %68 = vector.shape_cast %67 : vector<1x32x32xf32> to vector<32x32xf32>
    %cst_53 = arith.constant dense<0.000000e+00> : vector<16x32xf32>
    %69 = tpu.matmul %66, %68, %cst_53 {dimension_numbers = #tpu.dot_dimension_numbers<[1], [0], [0], [1], [0, 0, 1, 1], [], []>} : vector<16x32xf32>, vector<32x32xf32>, vector<16x32xf32> -> vector<16x32xf32>
    %70 = arith.addf %64, %69 : vector<16x32xf32>
    %c0_54 = arith.constant 0 : index
    %c10_55 = arith.constant 10 : index
    %c0_56 = arith.constant 0 : index
    %71 = vector.load %arg5[%c0_54, %c10_55, %c0_56] : memref<1x32x32xf32, #tpu.memory_space<vmem>>, vector<1x16x32xf32>
    %72 = vector.shape_cast %71 : vector<1x16x32xf32> to vector<16x32xf32>
    %73 = vector.extract_strided_slice %0 {offsets = [4, 0, 0], sizes = [1, 32, 32], strides = [1, 1, 1]} : vector<5x32x32xf32> to vector<1x32x32xf32>
    %74 = vector.shape_cast %73 : vector<1x32x32xf32> to vector<32x32xf32>
    %cst_57 = arith.constant dense<0.000000e+00> : vector<16x32xf32>
    %75 = tpu.matmul %72, %74, %cst_57 {dimension_numbers = #tpu.dot_dimension_numbers<[1], [0], [0], [1], [0, 0, 1, 1], [], []>} : vector<16x32xf32>, vector<32x32xf32>, vector<16x32xf32> -> vector<16x32xf32>
    %76 = arith.addf %70, %75 : vector<16x32xf32>
    %77 = vector.broadcast %1 : vector<1x32xf32> to vector<16x32xf32>
    %78 = arith.addf %76, %77 : vector<16x32xf32>
    %79 = vector.shape_cast %78 : vector<16x32xf32> to vector<1x16x32xf32>
    %80 = arith.addf %79, %12 : vector<1x16x32xf32>
    %cst_58 = arith.constant 0.000000e+00 : f32
    %81 = vector.broadcast %cst_58 : f32 to vector<1x16x32xf32>
    %82 = arith.maximumf %80, %81 : vector<1x16x32xf32>
    %c0_59 = arith.constant 0 : index
    %c8_60 = arith.constant 8 : index
    %c0_61 = arith.constant 0 : index
    %83 = vector.load %arg5[%c0_59, %c8_60, %c0_61] : memref<1x32x32xf32, #tpu.memory_space<vmem>>, vector<1x16x32xf32>
    tpu.vector_store %arg5[%c0_59, %c8_60, %c0_61], %82 {strides = array<i32>} : memref<1x32x32xf32, #tpu.memory_space<vmem>>, vector<1x16x32xf32>,
    %c0_62 = arith.constant 0 : index
    %c8_63 = arith.constant 8 : index
    %c0_64 = arith.constant 0 : index
    %84 = tpu.strided_load %arg5[%c0_62, %c8_63, %c0_64] {strides = array<i32: 1, 2, 1>} : memref<1x32x32xf32, #tpu.memory_space<vmem>>, vector<1x6x32xf32>
    %c0_65 = arith.constant 0 : index
    %c9_66 = arith.constant 9 : index
    %c0_67 = arith.constant 0 : index
    %85 = tpu.strided_load %arg5[%c0_65, %c9_66, %c0_67] {strides = array<i32: 1, 2, 1>} : memref<1x32x32xf32, #tpu.memory_space<vmem>>, vector<1x6x32xf32>
    %86 = arith.maximumf %84, %85 : vector<1x6x32xf32>
    %c0_68 = arith.constant 0 : index
    %c10_69 = arith.constant 10 : index
    %c0_70 = arith.constant 0 : index
    %87 = tpu.strided_load %arg5[%c0_68, %c10_69, %c0_70] {strides = array<i32: 1, 2, 1>} : memref<1x32x32xf32, #tpu.memory_space<vmem>>, vector<1x6x32xf32>
    %88 = arith.maximumf %86, %87 : vector<1x6x32xf32>
    %c0_71 = arith.constant 0 : index
    %c11 = arith.constant 11 : index
    %c0_72 = arith.constant 0 : index
    %89 = tpu.strided_load %arg5[%c0_71, %c11, %c0_72] {strides = array<i32: 1, 2, 1>} : memref<1x32x32xf32, #tpu.memory_space<vmem>>, vector<1x6x32xf32>
    %90 = arith.maximumf %88, %89 : vector<1x6x32xf32>
    %c0_73 = arith.constant 0 : index
    %c12 = arith.constant 12 : index
    %c0_74 = arith.constant 0 : index
    %91 = tpu.strided_load %arg5[%c0_73, %c12, %c0_74] {strides = array<i32: 1, 2, 1>} : memref<1x32x32xf32, #tpu.memory_space<vmem>>, vector<1x6x32xf32>
    %92 = arith.maximumf %90, %91 : vector<1x6x32xf32>
    %c0_75 = arith.constant 0 : index
    %c0_76 = arith.constant 0 : index
    %c0_77 = arith.constant 0 : index
    %93 = vector.load %arg4[%c0_75, %c0_76, %c0_77] : memref<1x6x32xf32, #tpu.memory_space<vmem>>, vector<1x6x32xf32>
    tpu.vector_store %arg4[%c0_75, %c0_76, %c0_77], %92 {strides = array<i32>} : memref<1x6x32xf32, #tpu.memory_space<vmem>>, vector<1x6x32xf32>,
    return
  }
  func.func @transform_0(%arg0: i32) -> (i32, i32, i32) {
    %c0_i32 = arith.constant 0 : i32
    %c0_i32_0 = arith.constant 0 : i32
    %c0_i32_1 = arith.constant 0 : i32
    return %arg0, %c0_i32, %c0_i32_0 : i32, i32, i32
  }
  func.func @transform_1(%arg0: i32) -> (i32, i32, i32) {
    %c0_i32 = arith.constant 0 : i32
    %c0_i32_0 = arith.constant 0 : i32
    %c0_i32_1 = arith.constant 0 : i32
    %c0_i32_2 = arith.constant 0 : i32
    return %c0_i32, %c0_i32_0, %c0_i32_1 : i32, i32, i32
  }
  func.func @transform_2(%arg0: i32) -> (i32, i32) {
    %c0_i32 = arith.constant 0 : i32
    %c0_i32_0 = arith.constant 0 : i32
    %c0_i32_1 = arith.constant 0 : i32
    return %c0_i32, %c0_i32_0 : i32, i32
  }
  func.func @transform_3(%arg0: i32) -> (i32, i32, i32) {
    %c0_i32 = arith.constant 0 : i32
    %c0_i32_0 = arith.constant 0 : i32
    %c0_i32_1 = arith.constant 0 : i32
    return %arg0, %c0_i32, %c0_i32_0 : i32, i32, i32
  }
}

</mosaic_0001>

<bundles_post_ra>
// kernel: tpu_custom_call.1
= control target key start
LH: loop header
LB: loop body
LE: loop exit
PB: predicated region body
PF: predicated region fallthrough
CT: control target
= control target key end

     0   :  { %8 = vsyncpa [#allocation4], 0  ;;  %s1575_s12 = smov 0   ;;  %s1692_s0 = inlined_call_operand.vmem [shape: f32[2,32,16], index: 0, kind: input, shape index: {}]   ;;  %s1693_s1 = inlined_call_operand.hbm [shape: f32[5,32,32], index: 1, kind: input, shape index: {}]   ;;  %s1694_s2 = inlined_call_operand.vmem [shape: f32[1,32], index: 2, kind: input, shape index: {}]   ;;  %s1695_s3 = inlined_call_operand.vmem [shape: f32[2,6,32], index: 3, kind: output, shape index: {}]  }
   0x1 LB: > { %s1581_s13 = sadd.s32 4294967295, %s1549_s12   ;;  %p1191_p0 = scmp.ge.s32.totalorder %s1549_s12, 1  ;;  %s1549_s12 = sphi %s1575_s12, %s14_s12  }
   0x2   : > { %p113_p1 = scmp.lt.s32.totalorder %s1549_s12, 3  ;;  %s1551_s14 = smov [#allocation3]  }
   0x3   : > { %s125_s15 = sshll.u32 %s1551_s14, 4  ;;  %p1696_p3 = scmp.eq.s32.totalorder %s1581_s13, 0  ;;  %s126_s15 = int_to_ptr.vmem [resolvable:$true] %s125_s15 }
   0x4   : > { %p1585_p2 = pnand %p1191_p0, %p113_p1  ;;  %s1511_s20 = scalar_lea.hbm %s1693_s1, 2560 }
   0x5   : > { %p1512_p6 = scmp.ne.s32.totalorder %s1693_s1, %s1511_s20  ;;  %p1518_p10 = scmp.lt.u32.totalorder %s1511_s20, %s1693_s1 }
   0x6   : > { %s1698_s16 = scalar_select %p1585_p2, 1, 0 }
   0x7   : > { %p1493_p4 = pneg %p1585_p2 }
   0x9   : > { %p1594_p5 = pnand %p1696_p3, %p1493_p4 }
   0xb   : > { %p1513_p7 = pneg %p1594_p5 }
   0xd   : > { %p1514_p8 = pnand %p1513_p7, %p1512_p6 }
   0xf   : > { %p1515_p9 = pneg %p1514_p8 }
  0x11   : > { %p1520_p11 = pnand %p1518_p10, %p1515_p9 }
  0x13   : > { %1523 = shalt.err (!%p1520_p11)
}
  0x14   : > { %s1524_s25 = scalar_lea.vmem %s126_s15, 2560  ;;  %p1532_p1 = scmp.lt.s32.totalorder %s126_s15, %s126_s15 }
  0x15   : > { %p1525_p12 = scmp.ne.s32.totalorder %s126_s15, %s1524_s25  ;;  %p1533_p4 = scmp.lt.s32.totalorder %s1524_s25, %s1524_s25 }
  0x17   : > { %p1527_p13 = pnand %p1525_p12, %p1513_p7  ;;  %p1534_p3 = por %p1533_p4, %p1532_p1 }
  0x19   : > { %p1528_p0 = pneg %p1527_p13 }
  0x1b   : > { %p1535_p2 = pnand %p1534_p3, %p1528_p0 }
  0x1d   : > { %1538 = shalt.err (!%p1535_p2)
}
  0x1e   : > { %s1552_s26 = smov 128   ;;  %s1553_s27 = smov 8  }
  0x1f   : > { %1496 = dma.hbm_to_vmem [thread:$0]  (!%p1594_p5), %s1693_s1, 2560, %s126_s15, [#allocation4], %s1552_s26, %s1552_s26, %s1553_s27  }
  0x20   : > { %p1700_p6 = scmp.ne.s32.totalorder %s1698_s16, 0 }
  0x21   : > { %p1701_p8 = scmp.eq.s32.totalorder (!%p1700_p6), %s1581_s13, 0 }
  0x22   : > { %152 = sbr.rel (%p1700_p6) target bundleno = 715 (0x2cb), region = 32 }
  0x29   : > { %1544 = dma.done.wait (%p1701_p8), [#allocation4], 2560   ;;  %p1702_p7 = pmov %p1701_p8 }
  0x2a   : > { %p175_p2 = scmp.lt.s32.totalorder %s1581_s13, 1  ;;  %vm205_vm0 = vcmask 261120   ;;  %v1554_v2 = vmov 0.0   ;;  %v188_v3 = vld [vmem:[#allocation3 + $0x20] sm:$0xff]  ;;  %v189_v4 = vld [vmem:[#allocation3 + $0x28] sm:$0xff]  ;;  %v190_v7 = vld [vmem:[#allocation3 + $0x30] sm:$0xff] }
  0x2b   : > { %1546 = vsyncadd (%p1702_p7), [#allocation4], 4294964736  ;;  %206 = vst.msk [vmem:[#allocation2] sm:$0xff] %vm205_vm0, %v1554_v2  ;;  %v1393_v5 = vpack.c.bf16 %v189_v4, %v188_v3  ;;  %v191_v8 = vld [vmem:[#allocation3 + $0x38] sm:$0xff]  ;;  %v184_v11 = vld [vmem:[#allocation3] sm:$0xff]  ;;  %vm1122_vm1 = vcmask 259072  }
  0x2c   : > { %s1704_s13 = smov (!%p175_p2, %s1581_s13), 1  ;;  %207 = vst.msk [vmem:[#allocation2 + $0x18] sm:$0xff] %vm205_vm0, %v1554_v2  ;;  %v1397_v9 = vpack.c.bf16 %v191_v8, %v190_v7  ;;  %v185_v12 = vld [vmem:[#allocation3 + $0x8] sm:$0xff]  ;;  %v186_v17 = vld [vmem:[#allocation3 + $0x10] sm:$0xff]  ;;  %v187_v18 = vld [vmem:[#allocation3 + $0x18] sm:$0xff] }
  0x2d   : > { %s1222_s30 = sshll.u32 %s1704_s13, 5  ;;  %1394 = vmatprep.subr.bf16.mxu0 %v1393_v5  ;;  %1434 = vmatprep.subr.bf16.mxu1 %v1393_v5  ;;  %v1630_v13 = vpack.c.bf16 %v185_v12, %v184_v11  ;;  %v1637_v19 = vpack.c.bf16 %v187_v18, %v186_v17  ;;  %v192_v21 = vld [vmem:[#allocation3 + $0x40] sm:$0xff]  ;;  %v193_v22 = vld [vmem:[#allocation3 + $0x48] sm:$0xff]  ;;  %v194_v25 = vld [vmem:[#allocation3 + $0x50] sm:$0xff]  ;;  %s1198_s9 = sshll.u32 %s1704_s13, 3 }
  0x2e   : > { %s179_s6 = scalar_lea.vmem %s1692_s0, %s1222_s30  ;;  %1396 = vmatpush3.bf16.msra.mxu0 %v1393_v5  ;;  %1436 = vmatpush3.bf16.msra.mxu1 %v1393_v5  ;;  %v1643_v24 = vpack.c.bf16 %v193_v22, %v192_v21  ;;  %v195_v26 = vld [vmem:[#allocation3 + $0x58] sm:$0xff]  ;;  %v196_v29 = vld [vmem:[#allocation3 + $0x60] sm:$0xff]  ;;  %v197_v30 = vld [vmem:[#allocation3 + $0x68] sm:$0xff]  ;;  %s183_s14 = scalar_lea.vmem %s1695_s3, %s1198_s9 }
  0x2f   : > { %v208_v0 = vld [vmem:[%s179_s6] sm:$0xff]  ;;  %v209_v1 = vld [vmem:[%s179_s6 + $0x8] sm:$0xff]  ;;  %v210_v6 = vld [vmem:[%s179_s6 + $0x10] sm:$0xff]  ;;  %1398 = vmatprep.subr.bf16.mxu0 %v1397_v9  ;;  %1438 = vmatprep.subr.bf16.mxu1 %v1397_v9  ;;  %v1413_v27 = vpack.c.bf16 %v195_v26, %v194_v25  ;;  %v1417_v32 = vpack.c.bf16 %v197_v30, %v196_v29 }
  0x30   : > { %212 = vxpose.xlu0.b32.start [1/4] (short) (narrow) %v208_v0, 16  ;;  %v211_v10 = vld [vmem:[%s179_s6 + $0x18] sm:$0xff]  ;;  %v198_v33 = vld [vmem:[#allocation3 + $0x70] sm:$0xff]  ;;  %v200_v37 = vld [vmem:[#allocation3 + $0x80] sm:$0xff] }
  0x31   : > { %v199_v34 = vld [vmem:[#allocation3 + $0x78] sm:$0xff]  ;;  %v201_v38 = vld [vmem:[#allocation3 + $0x88] sm:$0xff]  ;;  %v202_v41 = vld [vmem:[#allocation3 + $0x90] sm:$0xff] }
  0x32   : > { %1400 = vmatpush3.bf16.msra.mxu0 %v1397_v9  ;;  %1440 = vmatpush3.bf16.msra.mxu1 %v1397_v9  ;;  %v1421_v35 = vpack.c.bf16 %v199_v34, %v198_v33  ;;  %v1425_v40 = vpack.c.bf16 %v201_v38, %v200_v37  ;;  %v203_v42 = vld [vmem:[#allocation3 + $0x98] sm:$0xff]  ;;  %v1209_v47 = vld [vmem:[%s1694_s2] ss:$0 sm:$0xff] }
  0x33   : > { %1402 = vmatprep.subr.bf16.mxu0 %v1630_v13  ;;  %1442 = vmatprep.subr.bf16.mxu1 %v1630_v13  ;;  %v1429_v43 = vpack.c.bf16 %v203_v42, %v202_v41 }
  0x34   : > { %213 = vxpose.xlu0.b32.cont [2/4] (short) (narrow) %v209_v1, 16 }
  0x38   : > { %214 = vxpose.xlu0.b32.cont [3/4] (short) (narrow) %v210_v6, 16 }
  0x3c   : > { %215 = vxpose.xlu0.b32.end [4/4] (short) (narrow) %v211_v10, 16 }
  0xb0   : > { %v228_v14 = vpop.trf.xlu0 }
  0xb1   : > { %244 = vst.msk [vmem:[#allocation2 + $0x8] sm:$0xff] %vm205_vm0, %v228_v14 }
  0xb4   : > { %v229_v15 = vpop.trf.xlu0 }
  0xb5   : > { %245 = vst.msk [vmem:[#allocation2 + $0x10] sm:$0xff] %vm205_vm0, %v229_v15 }
  0xb8   : > { %v250_v16 = vld [vmem:[#allocation2 + $0x7] sm:$0xff] }
  0xb9   : > { %1291 = vmatprep.mubr.msk.f32.mxu0 %vm205_vm0, %v250_v16  ;;  %v248_v23 = vld [vmem:[#allocation2 + $0x6] sm:$0xff] }
  0xba   : > { %v1648_v31 = vld [vmem:[#allocation2 + $0x8] sm:$0xff] }
  0xbc   : > { %v251_v20 = vld [vmem:[#allocation2 + $0xf] sm:$0xff] }
  0xbd   : > { %1292 = vmatmul.mubr.msk.f32.vlgmr.msra.gmra.mrb[0].mxu0 %vm205_vm0, %v251_v20  ;;  %v249_v28 = vld [vmem:[#allocation2 + $0xe] sm:$0xff] }
  0xbe   : > { %1404 = vmatpush3.bf16.msra.mxu0 %v1630_v13  ;;  %1302 = vmatprep.mubr.msk.f32.mxu0 %vm205_vm0, %v248_v23  ;;  %v1653_v36 = vld [vmem:[#allocation2 + $0x10] sm:$0xff] }
  0xbf   : > { %1406 = vmatprep.subr.bf16.mxu0 %v1637_v19  ;;  %v497_v39 = vld [vmem:[#allocation2 + $0x9] sm:$0xff]  ;;  %v498_v44 = vld [vmem:[#allocation2 + $0x11] sm:$0xff] }
  0xc0   : > { %v582_v45 = vld [vmem:[#allocation2 + $0xa] sm:$0xff]  ;;  %v583_v46 = vld [vmem:[#allocation2 + $0x12] sm:$0xff] }
  0xc2   : > { %1408 = vmatpush3.bf16.msra.mxu0 %v1637_v19 }
  0xc3   : > { %1410 = vmatprep.subr.bf16.mxu0 %v1643_v24 }
  0xc5   : > { %1303 = vmatmul.mubr.msk.f32.vlgmr.msra.gmra.mrb[0].mxu0 %vm205_vm0, %v249_v28 }
  0xc6   : > { %1412 = vmatpush3.bf16.msra.mxu0 %v1643_v24  ;;  %1313 = vmatprep.mubr.msk.f32.mxu0 %vm205_vm0, %v1648_v31 }
  0xc7   : > { %1414 = vmatprep.subr.bf16.mxu0 %v1413_v27 }
  0xca   : > { %1416 = vmatpush3.bf16.msra.mxu0 %v1413_v27 }
  0xcb   : > { %1418 = vmatprep.subr.bf16.mxu0 %v1417_v32 }
  0xcd   : > { %1314 = vmatmul.mubr.msk.f32.vlgmr.msra.gmra.mrb[0].mxu0 %vm205_vm0, %v1653_v36 }
  0xce   : > { %1420 = vmatpush3.bf16.msra.mxu0 %v1417_v32  ;;  %1324 = vmatprep.mubr.msk.f32.mxu0 %vm205_vm0, %v497_v39 }
  0xcf   : > { %1422 = vmatprep.subr.bf16.mxu0 %v1421_v35 }
  0xd2   : > { %1424 = vmatpush3.bf16.msra.mxu0 %v1421_v35 }
  0xd3   : > { %1426 = vmatprep.subr.bf16.mxu0 %v1425_v40 }
  0xd5   : > { %1325 = vmatmul.mubr.msk.f32.vlgmr.msra.gmra.mrb[0].mxu0 %vm205_vm0, %v498_v44 }
  0xd6   : > { %1428 = vmatpush3.bf16.msra.mxu0 %v1425_v40  ;;  %1335 = vmatprep.mubr.msk.f32.mxu0 %vm205_vm0, %v582_v45 }
  0xd7   : > { %1430 = vmatprep.subr.bf16.mxu0 %v1429_v43 }
  0xda   : > { %1432 = vmatpush3.bf16.msra.mxu0 %v1429_v43 }
  0xdd   : > { %1336 = vmatmul.mubr.msk.f32.vlgmr.msra.gmra.mrb[0].mxu0 %vm205_vm0, %v583_v46 }
 0x1b0   : > { %v1337_v48 = vpop.f32.mrb[0].mxu0 }
 0x1b1   : > { %v674_v49 = vadd.f32 %v1337_v48, %v1209_v47  ;;  %v656_v50 = vpop.f32.mrb[1].mxu0 }
 0x1b2   : > { %v673_v51 = vadd.f32 %v1209_v47, %v656_v50 }
 0x1b3   : > { %v676_v52 = vmax.f32 %v674_v49, 0.0 }
 0x1b4   : > { %v675_v53 = vmax.f32 %v673_v51, 0.0 }
 0x1b5   : > { %678 = vst.msk [vmem:[#allocation2 + $0x10] sm:$0xff] %vm205_vm0, %v676_v52 }
 0x1b6   : > { %677 = vst.msk [vmem:[#allocation2 + $0x8] sm:$0xff] %vm205_vm0, %v675_v53 }
 0x1bc   : > { %v846_v59 = vld [vmem:[#allocation2 + $0x10] sm:$0xff] }
 0x1bd   : > { %v681_v54 = vld [vmem:[#allocation2 + $0x7] sm:$0xff]  ;;  %v682_v55 = vld [vmem:[#allocation2 + $0xf] sm:$0xff] }
 0x1be   : > { %1346 = vmatprep.mubr.msk.f32.mxu1 %vm205_vm0, %v681_v54  ;;  %v679_v56 = vld [vmem:[#allocation2 + $0x6] sm:$0xff]  ;;  %v680_v57 = vld [vmem:[#allocation2 + $0xe] sm:$0xff] }
 0x1bf   : > { %1347 = vmatmul.mubr.msk.f32.vlgmr.msra.gmra.mrb[0].mxu1 %vm205_vm0, %v682_v55  ;;  %v845_v58 = vld [vmem:[#allocation2 + $0x8] sm:$0xff]  ;;  %v931_v61 = vld [vmem:[#allocation2 + $0x11] sm:$0xff] }
 0x1c0   : > { %1444 = vmatpush3.bf16.msra.mxu1 %v1630_v13  ;;  %1357 = vmatprep.mubr.msk.f32.mxu1 %vm205_vm0, %v679_v56  ;;  %v930_v60 = vld [vmem:[#allocation2 + $0x9] sm:$0xff]  ;;  %v1016_v63 = vld [vmem:[#allocation2 + $0x12] sm:$0xff] }
 0x1c1   : > { %1446 = vmatprep.subr.bf16.mxu1 %v1637_v19  ;;  %v1015_v62 = vld [vmem:[#allocation2 + $0xa] sm:$0xff] }
 0x1c4   : > { %1448 = vmatpush3.bf16.msra.mxu1 %v1637_v19 }
 0x1c5   : > { %1450 = vmatprep.subr.bf16.mxu1 %v1643_v24 }
 0x1c7   : > { %1358 = vmatmul.mubr.msk.f32.vlgmr.msra.gmra.mrb[0].mxu1 %vm205_vm0, %v680_v57 }
 0x1c8   : > { %1452 = vmatpush3.bf16.msra.mxu1 %v1643_v24  ;;  %1368 = vmatprep.mubr.msk.f32.mxu1 %vm205_vm0, %v845_v58 }
 0x1c9   : > { %1454 = vmatprep.subr.bf16.mxu1 %v1413_v27 }
 0x1cc   : > { %1456 = vmatpush3.bf16.msra.mxu1 %v1413_v27 }
 0x1cd   : > { %1458 = vmatprep.subr.bf16.mxu1 %v1417_v32 }
 0x1cf   : > { %1369 = vmatmul.mubr.msk.f32.vlgmr.msra.gmra.mrb[0].mxu1 %vm205_vm0, %v846_v59 }
 0x1d0   : > { %1460 = vmatpush3.bf16.msra.mxu1 %v1417_v32  ;;  %1379 = vmatprep.mubr.msk.f32.mxu1 %vm205_vm0, %v930_v60 }
 0x1d1   : > { %1462 = vmatprep.subr.bf16.mxu1 %v1421_v35 }
 0x1d4   : > { %1464 = vmatpush3.bf16.msra.mxu1 %v1421_v35 }
 0x1d5   : > { %1466 = vmatprep.subr.bf16.mxu1 %v1425_v40 }
 0x1d7   : > { %1380 = vmatmul.mubr.msk.f32.vlgmr.msra.gmra.mrb[0].mxu1 %vm205_vm0, %v931_v61 }
 0x1d8   : > { %1468 = vmatpush3.bf16.msra.mxu1 %v1425_v40  ;;  %1390 = vmatprep.mubr.msk.f32.mxu1 %vm205_vm0, %v1015_v62 }
 0x1d9   : > { %1470 = vmatprep.subr.bf16.mxu1 %v1429_v43 }
 0x1dc   : > { %1472 = vmatpush3.bf16.msra.mxu1 %v1429_v43 }
 0x1df   : > { %1391 = vmatmul.mubr.msk.f32.vlgmr.msra.gmra.mrb[0].mxu1 %vm205_vm0, %v1016_v63 }
 0x2b2   : > { %v1392_v0 = vpop.f32.mrb[0].mxu1 }
 0x2b3   : > { %v1101_v1 = vadd.f32 %v1392_v0, %v1209_v47  ;;  %v1089_v2 = vpop.f32.mrb[1].mxu1 }
 0x2b4   : > { %v1100_v3 = vadd.f32 %v1209_v47, %v1089_v2 }
 0x2b5   : > { %v1103_v4 = vadd.f32 %v1101_v1, %v1653_v36 }
 0x2b6   : > { %v1102_v5 = vadd.f32 %v1100_v3, %v1648_v31 }
 0x2b7   : > { %v1105_v6 = vmax.f32 %v1103_v4, 0.0 }
 0x2b8   : > { %v1104_v7 = vmax.f32 %v1102_v5, 0.0 }
 0x2b9   : > { %1107 = vst.msk [vmem:[#allocation2 + $0x10] sm:$0xff] %vm205_vm0, %v1105_v6 }
 0x2ba   : > { %1106 = vst.msk [vmem:[#allocation2 + $0x8] sm:$0xff] %vm205_vm0, %v1104_v7 }
 0x2c1   : > { %v1109_v8 = vld [vmem:[#allocation2 + $0x8] ss:$2 sm:$0x3f]  ;;  %v1111_v9 = vld [vmem:[#allocation2 + $0x9] ss:$2 sm:$0x3f] }
 0x2c2   : > { %v1112_v10 = vmax.f32 %v1109_v8, %v1111_v9  ;;  %v1114_v11 = vld [vmem:[#allocation2 + $0xa] ss:$2 sm:$0x3f]  ;;  %v1117_v13 = vld [vmem:[#allocation2 + $0xb] ss:$2 sm:$0x3f] }
 0x2c3   : > { %v1120_v15 = vld [vmem:[#allocation2 + $0xc] ss:$2 sm:$0x3f] }
 0x2c4   : > { %v1115_v12 = vmax.f32 %v1112_v10, %v1114_v11 }
 0x2c6   : > { %v1118_v14 = vmax.f32 %v1115_v12, %v1117_v13 }
 0x2c8   : > { %v1121_v16 = vmax.f32 %v1118_v14, %v1120_v15 }
 0x2ca   : > { %1123 = vst.msk [vmem:[%s183_s14] sm:$0x3f] %vm1122_vm1, %v1121_v16 }
 0x2cb PF: > { %s14_s12 = sadd.s32 1, %s1549_s12  }
 0x2cc   : > { %p11_p3 = scmp.ge.s32.totalorder %s14_s12, 4  }
 0x2ce   :  { %13 = sbr.rel (!%p11_p3) target bundleno = 1 (0x1), region = 72 }
 0x2d5   :  { %1143 = vsyncpa [#allocation4], 1 }
 0x2d6   :  { %1145 = vsyncpa [#allocation4 + $0x1], 1 }

</bundles_post_ra>
